<compile_context>
chip_gen: v7x
topology: tpu7x:2x2x1
jax: 0.10.0
libtpu: 0.0.40
codegen_flags: <defaults>
</compile_context>

<pallas_src>
import functools

import jax
import jax.numpy as jnp
from jax.experimental import pallas as pl
from jax.experimental.pallas import tpu as pltpu


def _spectral_mix_kernel(x_ref, w_ref, o_ref, *, c_in, c_out):
    """out[p, o, s, l] accumulates the complex product sum_i x[:, i] * w[:, i, o].

    x_ref: (2, C_in, S, L)         axis0 = (real, imag), L = 2*modes1*modes2
    w_ref: (2, C_in, C_out, S, L)  weights pre-replicated across the S sublanes
    o_ref: (2, C_out, S, L)
    """
    # Hoist all input loads: each x_ref[p, i] is a full (S, L) = (8, 128) slab.
    xr = [x_ref[0, i] for i in range(c_in)]
    xi = [x_ref[1, i] for i in range(c_in)]

    for o in range(c_out):                      # static unroll; channel counts tiny
        acc_r = None
        acc_i = None
        for i in range(c_in):
            ar, ai = xr[i], xi[i]               # (S, L) full vregs
            br = w_ref[0, i, o]                 # (S, L) full vreg, no broadcast
            bi = w_ref[1, i, o]
            pr = ar * br - ai * bi              # pure VPU elementwise
            pi = ar * bi + ai * br
            acc_r = pr if acc_r is None else acc_r + pr
            acc_i = pi if acc_i is None else acc_i + pi
        o_ref[0, o] = acc_r                     # full unmasked (8, 128) store
        o_ref[1, o] = acc_i


def pack_spectral_weights(weights1, weights2, num_samples):
    """Pack the two complex weight tensors into the kernel layout.

    Call ONCE per parameter update (weights are parameters, not activations).
    Returns (2, C_in, C_out, S, 2*modes1*modes2) float32, axis0 = (real, imag),
    with the two mode regions concatenated along the lane axis and the weight
    rows pre-replicated across the S sublanes.
    """
    c_in, c_out, m1, m2 = weights1.shape
    L = 2 * m1 * m2
    # Region-concat along the modes1 axis -> flattens to [region0 | region1] lanes.
    w = jnp.concatenate([weights1, weights2], axis=-2).reshape(c_in, c_out, L)
    w = jnp.stack([jnp.real(w), jnp.imag(w)], axis=0).astype(jnp.float32)
    w = jnp.broadcast_to(w[:, :, :, None, :], (2, c_in, c_out, num_samples, L))
    return w


def spectral_conv2d_forward(x, w_packed, modes1, modes2):
    """SpectralConv2d_in.forward.  x: (B, N, C_in, H, W) real,
    w_packed: output of pack_spectral_weights."""
    B, N, C_in, H, W = x.shape
    C_out = w_packed.shape[2]
    Wf = W // 2 + 1
    S = B * N
    M = modes1 * modes2
    L = 2 * M
    assert modes1 <= H and modes2 <= Wf
    assert w_packed.shape == (2, C_in, C_out, S, L)

    # TODO(synk): rfft2 / irfft2 have no Pallas lowering; they run as XLA ops here.
    x_ft = jnp.fft.rfft2(x.astype(jnp.float32))               # (B,N,C_in,H,Wf) c64

    # Gather both retained-mode blocks and fold them into the lane axis:
    # concat along the modes1 axis -> flatten -> lanes = [top block | bottom block].
    top = x_ft[:, :, :, :modes1, :modes2]
    bot = x_ft[:, :, :, H - modes1:, :modes2]
    xm = jnp.concatenate([top, bot], axis=-2)                  # (B,N,C_in,2*m1,m2)
    xm = jnp.transpose(xm, (2, 0, 1, 3, 4)).reshape(C_in, S, L)
    x_packed = jnp.stack([jnp.real(xm), jnp.imag(xm)], axis=0).astype(jnp.float32)

    kernel = functools.partial(_spectral_mix_kernel, c_in=C_in, c_out=C_out)
    out = pl.pallas_call(
        kernel,
        out_shape=jax.ShapeDtypeStruct((2, C_out, S, L), jnp.float32),
        in_specs=[
            pl.BlockSpec((2, C_in, S, L), lambda: (0, 0, 0, 0)),
            pl.BlockSpec((2, C_in, C_out, S, L), lambda: (0, 0, 0, 0, 0)),
        ],
        out_specs=pl.BlockSpec((2, C_out, S, L), lambda: (0, 0, 0, 0)),
    )(x_packed, w_packed)

    # Scatter the mixed modes back into the (zero) spectrum and inverse-FFT.
    out_c = (out[0] + 1j * out[1]).astype(jnp.complex64)       # (C_out, S, L)
    out_c = out_c.reshape(C_out, B, N, 2 * modes1, modes2)
    out_c = jnp.transpose(out_c, (1, 2, 0, 3, 4))              # (B,N,C_out,2*m1,m2)

    out_ft = jnp.zeros((B, N, C_out, H, Wf), jnp.complex64)
    out_ft = out_ft.at[:, :, :, :modes1, :modes2].set(out_c[..., :modes1, :])
    out_ft = out_ft.at[:, :, :, H - modes1:, :modes2].set(out_c[..., modes1:, :])
    return jnp.fft.irfft2(out_ft, s=(H, W))                    # (B, N, C_out, H, W)


def spectral_conv2d_reference(x, weights1, weights2, modes1, modes2):
    """Pure-JAX reference mirroring the PyTorch forward."""
    B, N, C_in, H, W = x.shape
    C_out = weights1.shape[1]
    x_ft = jnp.fft.rfft2(x.astype(jnp.float32))
    mul = lambda a, w: jnp.einsum('bnixy,ioxy->bnoxy', a, w)
    out_ft = jnp.zeros((B, N, C_out, H, W // 2 + 1), jnp.complex64)
    out_ft = out_ft.at[:, :, :, :modes1, :modes2].set(
        mul(x_ft[:, :, :, :modes1, :modes2], weights1))
    out_ft = out_ft.at[:, :, :, H - modes1:, :modes2].set(
        mul(x_ft[:, :, :, H - modes1:, :modes2], weights2))
    return jnp.fft.irfft2(out_ft, s=(H, W))


if __name__ == "__main__":
    B, N, C_in, C_out, H, W = 2, 4, 4, 4, 16, 16
    modes1, modes2 = 8, 8            # modes1 <= H//2, modes2 <= W//2 + 1

    key = jax.random.PRNGKey(0)
    k_x, k_w1r, k_w1i, k_w2r, k_w2i = jax.random.split(key, 5)

    scale = 1.0 / (C_in * C_out)

    def cweights(kr, ki):
        re = jax.random.uniform(kr, (C_in, C_out, modes1, modes2), jnp.float32)
        im = jax.random.uniform(ki, (C_in, C_out, modes1, modes2), jnp.float32)
        return (scale * (re + 1j * im)).astype(jnp.complex64)

    weights1 = cweights(k_w1r, k_w1i)
    weights2 = cweights(k_w2r, k_w2i)
    x = jax.random.normal(k_x, (B, N, C_in, H, W), jnp.float32)

    # Pack weights once (parameters), then run the per-step forward.
    w_packed = pack_spectral_weights(weights1, weights2, B * N)
    fwd = jax.jit(lambda xx, ww: spectral_conv2d_forward(xx, ww, modes1, modes2))

    out = fwd(x, w_packed)
    jax.block_until_ready(out)

    ref = spectral_conv2d_reference(x, weights1, weights2, modes1, modes2)
    max_err = float(jnp.max(jnp.abs(out - ref)))
    assert out.shape == (B, N, C_out, H, W)
    assert jnp.allclose(out, ref, rtol=1e-4, atol=1e-5), f"max_err={max_err}"
    print("KERNEL_OK")
</pallas_src>

<mosaic_0001>
module attributes {stable_mosaic.version = 11 : i64} {
  func.func @_spectral_mix_kernel(%arg0: memref<2x4x8x128xf32, #tpu.memory_space<vmem>>, %arg1: memref<2x4x4x8x128xf32, #tpu.memory_space<vmem>>, %arg2: memref<2x4x8x128xf32, #tpu.memory_space<vmem>>) attributes {dimension_semantics = [], scalar_prefetch = 0 : i64, scratch_operands = 0 : i64, tpu.core_type = #tpu.core_type<tc>} {
    %c0 = arith.constant 0 : index
    %c0_0 = arith.constant 0 : index
    %c0_1 = arith.constant 0 : index
    %c0_2 = arith.constant 0 : index
    %0 = vector.load %arg0[%c0, %c0_0, %c0_1, %c0_2] : memref<2x4x8x128xf32, #tpu.memory_space<vmem>>, vector<1x1x8x128xf32>
    %1 = vector.shape_cast %0 : vector<1x1x8x128xf32> to vector<8x128xf32>
    %c0_3 = arith.constant 0 : index
    %c1 = arith.constant 1 : index
    %c0_4 = arith.constant 0 : index
    %c0_5 = arith.constant 0 : index
    %2 = vector.load %arg0[%c0_3, %c1, %c0_4, %c0_5] : memref<2x4x8x128xf32, #tpu.memory_space<vmem>>, vector<1x1x8x128xf32>
    %3 = vector.shape_cast %2 : vector<1x1x8x128xf32> to vector<8x128xf32>
    %c0_6 = arith.constant 0 : index
    %c2 = arith.constant 2 : index
    %c0_7 = arith.constant 0 : index
    %c0_8 = arith.constant 0 : index
    %4 = vector.load %arg0[%c0_6, %c2, %c0_7, %c0_8] : memref<2x4x8x128xf32, #tpu.memory_space<vmem>>, vector<1x1x8x128xf32>
    %5 = vector.shape_cast %4 : vector<1x1x8x128xf32> to vector<8x128xf32>
    %c0_9 = arith.constant 0 : index
    %c3 = arith.constant 3 : index
    %c0_10 = arith.constant 0 : index
    %c0_11 = arith.constant 0 : index
    %6 = vector.load %arg0[%c0_9, %c3, %c0_10, %c0_11] : memref<2x4x8x128xf32, #tpu.memory_space<vmem>>, vector<1x1x8x128xf32>
    %7 = vector.shape_cast %6 : vector<1x1x8x128xf32> to vector<8x128xf32>
    %c1_12 = arith.constant 1 : index
    %c0_13 = arith.constant 0 : index
    %c0_14 = arith.constant 0 : index
    %c0_15 = arith.constant 0 : index
    %8 = vector.load %arg0[%c1_12, %c0_13, %c0_14, %c0_15] : memref<2x4x8x128xf32, #tpu.memory_space<vmem>>, vector<1x1x8x128xf32>
    %9 = vector.shape_cast %8 : vector<1x1x8x128xf32> to vector<8x128xf32>
    %c1_16 = arith.constant 1 : index
    %c1_17 = arith.constant 1 : index
    %c0_18 = arith.constant 0 : index
    %c0_19 = arith.constant 0 : index
    %10 = vector.load %arg0[%c1_16, %c1_17, %c0_18, %c0_19] : memref<2x4x8x128xf32, #tpu.memory_space<vmem>>, vector<1x1x8x128xf32>
    %11 = vector.shape_cast %10 : vector<1x1x8x128xf32> to vector<8x128xf32>
    %c1_20 = arith.constant 1 : index
    %c2_21 = arith.constant 2 : index
    %c0_22 = arith.constant 0 : index
    %c0_23 = arith.constant 0 : index
    %12 = vector.load %arg0[%c1_20, %c2_21, %c0_22, %c0_23] : memref<2x4x8x128xf32, #tpu.memory_space<vmem>>, vector<1x1x8x128xf32>
    %13 = vector.shape_cast %12 : vector<1x1x8x128xf32> to vector<8x128xf32>
    %c1_24 = arith.constant 1 : index
    %c3_25 = arith.constant 3 : index
    %c0_26 = arith.constant 0 : index
    %c0_27 = arith.constant 0 : index
    %14 = vector.load %arg0[%c1_24, %c3_25, %c0_26, %c0_27] : memref<2x4x8x128xf32, #tpu.memory_space<vmem>>, vector<1x1x8x128xf32>
    %15 = vector.shape_cast %14 : vector<1x1x8x128xf32> to vector<8x128xf32>
    %c0_28 = arith.constant 0 : index
    %c0_29 = arith.constant 0 : index
    %c0_30 = arith.constant 0 : index
    %c0_31 = arith.constant 0 : index
    %c0_32 = arith.constant 0 : index
    %16 = vector.load %arg1[%c0_28, %c0_29, %c0_30, %c0_31, %c0_32] : memref<2x4x4x8x128xf32, #tpu.memory_space<vmem>>, vector<1x1x1x8x128xf32>
    %17 = vector.shape_cast %16 : vector<1x1x1x8x128xf32> to vector<8x128xf32>
    %c1_33 = arith.constant 1 : index
    %c0_34 = arith.constant 0 : index
    %c0_35 = arith.constant 0 : index
    %c0_36 = arith.constant 0 : index
    %c0_37 = arith.constant 0 : index
    %18 = vector.load %arg1[%c1_33, %c0_34, %c0_35, %c0_36, %c0_37] : memref<2x4x4x8x128xf32, #tpu.memory_space<vmem>>, vector<1x1x1x8x128xf32>
    %19 = vector.shape_cast %18 : vector<1x1x1x8x128xf32> to vector<8x128xf32>
    %20 = arith.mulf %1, %17 : vector<8x128xf32>
    %21 = arith.mulf %9, %19 : vector<8x128xf32>
    %22 = arith.subf %20, %21 : vector<8x128xf32>
    %23 = arith.mulf %1, %19 : vector<8x128xf32>
    %24 = arith.mulf %9, %17 : vector<8x128xf32>
    %25 = arith.addf %23, %24 : vector<8x128xf32>
    %c0_38 = arith.constant 0 : index
    %c1_39 = arith.constant 1 : index
    %c0_40 = arith.constant 0 : index
    %c0_41 = arith.constant 0 : index
    %c0_42 = arith.constant 0 : index
    %26 = vector.load %arg1[%c0_38, %c1_39, %c0_40, %c0_41, %c0_42] : memref<2x4x4x8x128xf32, #tpu.memory_space<vmem>>, vector<1x1x1x8x128xf32>
    %27 = vector.shape_cast %26 : vector<1x1x1x8x128xf32> to vector<8x128xf32>
    %c1_43 = arith.constant 1 : index
    %c1_44 = arith.constant 1 : index
    %c0_45 = arith.constant 0 : index
    %c0_46 = arith.constant 0 : index
    %c0_47 = arith.constant 0 : index
    %28 = vector.load %arg1[%c1_43, %c1_44, %c0_45, %c0_46, %c0_47] : memref<2x4x4x8x128xf32, #tpu.memory_space<vmem>>, vector<1x1x1x8x128xf32>
    %29 = vector.shape_cast %28 : vector<1x1x1x8x128xf32> to vector<8x128xf32>
    %30 = arith.mulf %3, %27 : vector<8x128xf32>
    %31 = arith.mulf %11, %29 : vector<8x128xf32>
    %32 = arith.subf %30, %31 : vector<8x128xf32>
    %33 = arith.mulf %3, %29 : vector<8x128xf32>
    %34 = arith.mulf %11, %27 : vector<8x128xf32>
    %35 = arith.addf %33, %34 : vector<8x128xf32>
    %36 = arith.addf %22, %32 : vector<8x128xf32>
    %37 = arith.addf %25, %35 : vector<8x128xf32>
    %c0_48 = arith.constant 0 : index
    %c2_49 = arith.constant 2 : index
    %c0_50 = arith.constant 0 : index
    %c0_51 = arith.constant 0 : index
    %c0_52 = arith.constant 0 : index
    %38 = vector.load %arg1[%c0_48, %c2_49, %c0_50, %c0_51, %c0_52] : memref<2x4x4x8x128xf32, #tpu.memory_space<vmem>>, vector<1x1x1x8x128xf32>
    %39 = vector.shape_cast %38 : vector<1x1x1x8x128xf32> to vector<8x128xf32>
    %c1_53 = arith.constant 1 : index
    %c2_54 = arith.constant 2 : index
    %c0_55 = arith.constant 0 : index
    %c0_56 = arith.constant 0 : index
    %c0_57 = arith.constant 0 : index
    %40 = vector.load %arg1[%c1_53, %c2_54, %c0_55, %c0_56, %c0_57] : memref<2x4x4x8x128xf32, #tpu.memory_space<vmem>>, vector<1x1x1x8x128xf32>
    %41 = vector.shape_cast %40 : vector<1x1x1x8x128xf32> to vector<8x128xf32>
    %42 = arith.mulf %5, %39 : vector<8x128xf32>
    %43 = arith.mulf %13, %41 : vector<8x128xf32>
    %44 = arith.subf %42, %43 : vector<8x128xf32>
    %45 = arith.mulf %5, %41 : vector<8x128xf32>
    %46 = arith.mulf %13, %39 : vector<8x128xf32>
    %47 = arith.addf %45, %46 : vector<8x128xf32>
    %48 = arith.addf %36, %44 : vector<8x128xf32>
    %49 = arith.addf %37, %47 : vector<8x128xf32>
    %c0_58 = arith.constant 0 : index
    %c3_59 = arith.constant 3 : index
    %c0_60 = arith.constant 0 : index
    %c0_61 = arith.constant 0 : index
    %c0_62 = arith.constant 0 : index
    %50 = vector.load %arg1[%c0_58, %c3_59, %c0_60, %c0_61, %c0_62] : memref<2x4x4x8x128xf32, #tpu.memory_space<vmem>>, vector<1x1x1x8x128xf32>
    %51 = vector.shape_cast %50 : vector<1x1x1x8x128xf32> to vector<8x128xf32>
    %c1_63 = arith.constant 1 : index
    %c3_64 = arith.constant 3 : index
    %c0_65 = arith.constant 0 : index
    %c0_66 = arith.constant 0 : index
    %c0_67 = arith.constant 0 : index
    %52 = vector.load %arg1[%c1_63, %c3_64, %c0_65, %c0_66, %c0_67] : memref<2x4x4x8x128xf32, #tpu.memory_space<vmem>>, vector<1x1x1x8x128xf32>
    %53 = vector.shape_cast %52 : vector<1x1x1x8x128xf32> to vector<8x128xf32>
    %54 = arith.mulf %7, %51 : vector<8x128xf32>
    %55 = arith.mulf %15, %53 : vector<8x128xf32>
    %56 = arith.subf %54, %55 : vector<8x128xf32>
    %57 = arith.mulf %7, %53 : vector<8x128xf32>
    %58 = arith.mulf %15, %51 : vector<8x128xf32>
    %59 = arith.addf %57, %58 : vector<8x128xf32>
    %60 = arith.addf %48, %56 : vector<8x128xf32>
    %61 = arith.addf %49, %59 : vector<8x128xf32>
    %c0_68 = arith.constant 0 : index
    %c0_69 = arith.constant 0 : index
    %c0_70 = arith.constant 0 : index
    %c0_71 = arith.constant 0 : index
    %62 = vector.load %arg2[%c0_68, %c0_69, %c0_70, %c0_71] : memref<2x4x8x128xf32, #tpu.memory_space<vmem>>, vector<1x1x8x128xf32>
    %63 = vector.shape_cast %62 : vector<1x1x8x128xf32> to vector<8x128xf32>
    %64 = vector.shape_cast %60 : vector<8x128xf32> to vector<1x1x8x128xf32>
    tpu.vector_store %arg2[%c0_68, %c0_69, %c0_70, %c0_71], %64 {strides = array<i32>} : memref<2x4x8x128xf32, #tpu.memory_space<vmem>>, vector<1x1x8x128xf32>,
    %c1_72 = arith.constant 1 : index
    %c0_73 = arith.constant 0 : index
    %c0_74 = arith.constant 0 : index
    %c0_75 = arith.constant 0 : index
    %65 = vector.load %arg2[%c1_72, %c0_73, %c0_74, %c0_75] : memref<2x4x8x128xf32, #tpu.memory_space<vmem>>, vector<1x1x8x128xf32>
    %66 = vector.shape_cast %65 : vector<1x1x8x128xf32> to vector<8x128xf32>
    %67 = vector.shape_cast %61 : vector<8x128xf32> to vector<1x1x8x128xf32>
    tpu.vector_store %arg2[%c1_72, %c0_73, %c0_74, %c0_75], %67 {strides = array<i32>} : memref<2x4x8x128xf32, #tpu.memory_space<vmem>>, vector<1x1x8x128xf32>,
    %c0_76 = arith.constant 0 : index
    %c0_77 = arith.constant 0 : index
    %c1_78 = arith.constant 1 : index
    %c0_79 = arith.constant 0 : index
    %c0_80 = arith.constant 0 : index
    %68 = vector.load %arg1[%c0_76, %c0_77, %c1_78, %c0_79, %c0_80] : memref<2x4x4x8x128xf32, #tpu.memory_space<vmem>>, vector<1x1x1x8x128xf32>
    %69 = vector.shape_cast %68 : vector<1x1x1x8x128xf32> to vector<8x128xf32>
    %c1_81 = arith.constant 1 : index
    %c0_82 = arith.constant 0 : index
    %c1_83 = arith.constant 1 : index
    %c0_84 = arith.constant 0 : index
    %c0_85 = arith.constant 0 : index
    %70 = vector.load %arg1[%c1_81, %c0_82, %c1_83, %c0_84, %c0_85] : memref<2x4x4x8x128xf32, #tpu.memory_space<vmem>>, vector<1x1x1x8x128xf32>
    %71 = vector.shape_cast %70 : vector<1x1x1x8x128xf32> to vector<8x128xf32>
    %72 = arith.mulf %1, %69 : vector<8x128xf32>
    %73 = arith.mulf %9, %71 : vector<8x128xf32>
    %74 = arith.subf %72, %73 : vector<8x128xf32>
    %75 = arith.mulf %1, %71 : vector<8x128xf32>
    %76 = arith.mulf %9, %69 : vector<8x128xf32>
    %77 = arith.addf %75, %76 : vector<8x128xf32>
    %c0_86 = arith.constant 0 : index
    %c1_87 = arith.constant 1 : index
    %c1_88 = arith.constant 1 : index
    %c0_89 = arith.constant 0 : index
    %c0_90 = arith.constant 0 : index
    %78 = vector.load %arg1[%c0_86, %c1_87, %c1_88, %c0_89, %c0_90] : memref<2x4x4x8x128xf32, #tpu.memory_space<vmem>>, vector<1x1x1x8x128xf32>
    %79 = vector.shape_cast %78 : vector<1x1x1x8x128xf32> to vector<8x128xf32>
    %c1_91 = arith.constant 1 : index
    %c1_92 = arith.constant 1 : index
    %c1_93 = arith.constant 1 : index
    %c0_94 = arith.constant 0 : index
    %c0_95 = arith.constant 0 : index
    %80 = vector.load %arg1[%c1_91, %c1_92, %c1_93, %c0_94, %c0_95] : memref<2x4x4x8x128xf32, #tpu.memory_space<vmem>>, vector<1x1x1x8x128xf32>
    %81 = vector.shape_cast %80 : vector<1x1x1x8x128xf32> to vector<8x128xf32>
    %82 = arith.mulf %3, %79 : vector<8x128xf32>
    %83 = arith.mulf %11, %81 : vector<8x128xf32>
    %84 = arith.subf %82, %83 : vector<8x128xf32>
    %85 = arith.mulf %3, %81 : vector<8x128xf32>
    %86 = arith.mulf %11, %79 : vector<8x128xf32>
    %87 = arith.addf %85, %86 : vector<8x128xf32>
    %88 = arith.addf %74, %84 : vector<8x128xf32>
    %89 = arith.addf %77, %87 : vector<8x128xf32>
    %c0_96 = arith.constant 0 : index
    %c2_97 = arith.constant 2 : index
    %c1_98 = arith.constant 1 : index
    %c0_99 = arith.constant 0 : index
    %c0_100 = arith.constant 0 : index
    %90 = vector.load %arg1[%c0_96, %c2_97, %c1_98, %c0_99, %c0_100] : memref<2x4x4x8x128xf32, #tpu.memory_space<vmem>>, vector<1x1x1x8x128xf32>
    %91 = vector.shape_cast %90 : vector<1x1x1x8x128xf32> to vector<8x128xf32>
    %c1_101 = arith.constant 1 : index
    %c2_102 = arith.constant 2 : index
    %c1_103 = arith.constant 1 : index
    %c0_104 = arith.constant 0 : index
    %c0_105 = arith.constant 0 : index
    %92 = vector.load %arg1[%c1_101, %c2_102, %c1_103, %c0_104, %c0_105] : memref<2x4x4x8x128xf32, #tpu.memory_space<vmem>>, vector<1x1x1x8x128xf32>
    %93 = vector.shape_cast %92 : vector<1x1x1x8x128xf32> to vector<8x128xf32>
    %94 = arith.mulf %5, %91 : vector<8x128xf32>
    %95 = arith.mulf %13, %93 : vector<8x128xf32>
    %96 = arith.subf %94, %95 : vector<8x128xf32>
    %97 = arith.mulf %5, %93 : vector<8x128xf32>
    %98 = arith.mulf %13, %91 : vector<8x128xf32>
    %99 = arith.addf %97, %98 : vector<8x128xf32>
    %100 = arith.addf %88, %96 : vector<8x128xf32>
    %101 = arith.addf %89, %99 : vector<8x128xf32>
    %c0_106 = arith.constant 0 : index
    %c3_107 = arith.constant 3 : index
    %c1_108 = arith.constant 1 : index
    %c0_109 = arith.constant 0 : index
    %c0_110 = arith.constant 0 : index
    %102 = vector.load %arg1[%c0_106, %c3_107, %c1_108, %c0_109, %c0_110] : memref<2x4x4x8x128xf32, #tpu.memory_space<vmem>>, vector<1x1x1x8x128xf32>
    %103 = vector.shape_cast %102 : vector<1x1x1x8x128xf32> to vector<8x128xf32>
    %c1_111 = arith.constant 1 : index
    %c3_112 = arith.constant 3 : index
    %c1_113 = arith.constant 1 : index
    %c0_114 = arith.constant 0 : index
    %c0_115 = arith.constant 0 : index
    %104 = vector.load %arg1[%c1_111, %c3_112, %c1_113, %c0_114, %c0_115] : memref<2x4x4x8x128xf32, #tpu.memory_space<vmem>>, vector<1x1x1x8x128xf32>
    %105 = vector.shape_cast %104 : vector<1x1x1x8x128xf32> to vector<8x128xf32>
    %106 = arith.mulf %7, %103 : vector<8x128xf32>
    %107 = arith.mulf %15, %105 : vector<8x128xf32>
    %108 = arith.subf %106, %107 : vector<8x128xf32>
    %109 = arith.mulf %7, %105 : vector<8x128xf32>
    %110 = arith.mulf %15, %103 : vector<8x128xf32>
    %111 = arith.addf %109, %110 : vector<8x128xf32>
    %112 = arith.addf %100, %108 : vector<8x128xf32>
    %113 = arith.addf %101, %111 : vector<8x128xf32>
    %c0_116 = arith.constant 0 : index
    %c1_117 = arith.constant 1 : index
    %c0_118 = arith.constant 0 : index
    %c0_119 = arith.constant 0 : index
    %114 = vector.load %arg2[%c0_116, %c1_117, %c0_118, %c0_119] : memref<2x4x8x128xf32, #tpu.memory_space<vmem>>, vector<1x1x8x128xf32>
    %115 = vector.shape_cast %114 : vector<1x1x8x128xf32> to vector<8x128xf32>
    %116 = vector.shape_cast %112 : vector<8x128xf32> to vector<1x1x8x128xf32>
    tpu.vector_store %arg2[%c0_116, %c1_117, %c0_118, %c0_119], %116 {strides = array<i32>} : memref<2x4x8x128xf32, #tpu.memory_space<vmem>>, vector<1x1x8x128xf32>,
    %c1_120 = arith.constant 1 : index
    %c1_121 = arith.constant 1 : index
    %c0_122 = arith.constant 0 : index
    %c0_123 = arith.constant 0 : index
    %117 = vector.load %arg2[%c1_120, %c1_121, %c0_122, %c0_123] : memref<2x4x8x128xf32, #tpu.memory_space<vmem>>, vector<1x1x8x128xf32>
    %118 = vector.shape_cast %117 : vector<1x1x8x128xf32> to vector<8x128xf32>
    %119 = vector.shape_cast %113 : vector<8x128xf32> to vector<1x1x8x128xf32>
    tpu.vector_store %arg2[%c1_120, %c1_121, %c0_122, %c0_123], %119 {strides = array<i32>} : memref<2x4x8x128xf32, #tpu.memory_space<vmem>>, vector<1x1x8x128xf32>,
    %c0_124 = arith.constant 0 : index
    %c0_125 = arith.constant 0 : index
    %c2_126 = arith.constant 2 : index
    %c0_127 = arith.constant 0 : index
    %c0_128 = arith.constant 0 : index
    %120 = vector.load %arg1[%c0_124, %c0_125, %c2_126, %c0_127, %c0_128] : memref<2x4x4x8x128xf32, #tpu.memory_space<vmem>>, vector<1x1x1x8x128xf32>
    %121 = vector.shape_cast %120 : vector<1x1x1x8x128xf32> to vector<8x128xf32>
    %c1_129 = arith.constant 1 : index
    %c0_130 = arith.constant 0 : index
    %c2_131 = arith.constant 2 : index
    %c0_132 = arith.constant 0 : index
    %c0_133 = arith.constant 0 : index
    %122 = vector.load %arg1[%c1_129, %c0_130, %c2_131, %c0_132, %c0_133] : memref<2x4x4x8x128xf32, #tpu.memory_space<vmem>>, vector<1x1x1x8x128xf32>
    %123 = vector.shape_cast %122 : vector<1x1x1x8x128xf32> to vector<8x128xf32>
    %124 = arith.mulf %1, %121 : vector<8x128xf32>
    %125 = arith.mulf %9, %123 : vector<8x128xf32>
    %126 = arith.subf %124, %125 : vector<8x128xf32>
    %127 = arith.mulf %1, %123 : vector<8x128xf32>
    %128 = arith.mulf %9, %121 : vector<8x128xf32>
    %129 = arith.addf %127, %128 : vector<8x128xf32>
    %c0_134 = arith.constant 0 : index
    %c1_135 = arith.constant 1 : index
    %c2_136 = arith.constant 2 : index
    %c0_137 = arith.constant 0 : index
    %c0_138 = arith.constant 0 : index
    %130 = vector.load %arg1[%c0_134, %c1_135, %c2_136, %c0_137, %c0_138] : memref<2x4x4x8x128xf32, #tpu.memory_space<vmem>>, vector<1x1x1x8x128xf32>
    %131 = vector.shape_cast %130 : vector<1x1x1x8x128xf32> to vector<8x128xf32>
    %c1_139 = arith.constant 1 : index
    %c1_140 = arith.constant 1 : index
    %c2_141 = arith.constant 2 : index
    %c0_142 = arith.constant 0 : index
    %c0_143 = arith.constant 0 : index
    %132 = vector.load %arg1[%c1_139, %c1_140, %c2_141, %c0_142, %c0_143] : memref<2x4x4x8x128xf32, #tpu.memory_space<vmem>>, vector<1x1x1x8x128xf32>
    %133 = vector.shape_cast %132 : vector<1x1x1x8x128xf32> to vector<8x128xf32>
    %134 = arith.mulf %3, %131 : vector<8x128xf32>
    %135 = arith.mulf %11, %133 : vector<8x128xf32>
    %136 = arith.subf %134, %135 : vector<8x128xf32>
    %137 = arith.mulf %3, %133 : vector<8x128xf32>
    %138 = arith.mulf %11, %131 : vector<8x128xf32>
    %139 = arith.addf %137, %138 : vector<8x128xf32>
    %140 = arith.addf %126, %136 : vector<8x128xf32>
    %141 = arith.addf %129, %139 : vector<8x128xf32>
    %c0_144 = arith.constant 0 : index
    %c2_145 = arith.constant 2 : index
    %c2_146 = arith.constant 2 : index
    %c0_147 = arith.constant 0 : index
    %c0_148 = arith.constant 0 : index
    %142 = vector.load %arg1[%c0_144, %c2_145, %c2_146, %c0_147, %c0_148] : memref<2x4x4x8x128xf32, #tpu.memory_space<vmem>>, vector<1x1x1x8x128xf32>
    %143 = vector.shape_cast %142 : vector<1x1x1x8x128xf32> to vector<8x128xf32>
    %c1_149 = arith.constant 1 : index
    %c2_150 = arith.constant 2 : index
    %c2_151 = arith.constant 2 : index
    %c0_152 = arith.constant 0 : index
    %c0_153 = arith.constant 0 : index
    %144 = vector.load %arg1[%c1_149, %c2_150, %c2_151, %c0_152, %c0_153] : memref<2x4x4x8x128xf32, #tpu.memory_space<vmem>>, vector<1x1x1x8x128xf32>
    %145 = vector.shape_cast %144 : vector<1x1x1x8x128xf32> to vector<8x128xf32>
    %146 = arith.mulf %5, %143 : vector<8x128xf32>
    %147 = arith.mulf %13, %145 : vector<8x128xf32>
    %148 = arith.subf %146, %147 : vector<8x128xf32>
    %149 = arith.mulf %5, %145 : vector<8x128xf32>
    %150 = arith.mulf %13, %143 : vector<8x128xf32>
    %151 = arith.addf %149, %150 : vector<8x128xf32>
    %152 = arith.addf %140, %148 : vector<8x128xf32>
    %153 = arith.addf %141, %151 : vector<8x128xf32>
    %c0_154 = arith.constant 0 : index
    %c3_155 = arith.constant 3 : index
    %c2_156 = arith.constant 2 : index
    %c0_157 = arith.constant 0 : index
    %c0_158 = arith.constant 0 : index
    %154 = vector.load %arg1[%c0_154, %c3_155, %c2_156, %c0_157, %c0_158] : memref<2x4x4x8x128xf32, #tpu.memory_space<vmem>>, vector<1x1x1x8x128xf32>
    %155 = vector.shape_cast %154 : vector<1x1x1x8x128xf32> to vector<8x128xf32>
    %c1_159 = arith.constant 1 : index
    %c3_160 = arith.constant 3 : index
    %c2_161 = arith.constant 2 : index
    %c0_162 = arith.constant 0 : index
    %c0_163 = arith.constant 0 : index
    %156 = vector.load %arg1[%c1_159, %c3_160, %c2_161, %c0_162, %c0_163] : memref<2x4x4x8x128xf32, #tpu.memory_space<vmem>>, vector<1x1x1x8x128xf32>
    %157 = vector.shape_cast %156 : vector<1x1x1x8x128xf32> to vector<8x128xf32>
    %158 = arith.mulf %7, %155 : vector<8x128xf32>
    %159 = arith.mulf %15, %157 : vector<8x128xf32>
    %160 = arith.subf %158, %159 : vector<8x128xf32>
    %161 = arith.mulf %7, %157 : vector<8x128xf32>
    %162 = arith.mulf %15, %155 : vector<8x128xf32>
    %163 = arith.addf %161, %162 : vector<8x128xf32>
    %164 = arith.addf %152, %160 : vector<8x128xf32>
    %165 = arith.addf %153, %163 : vector<8x128xf32>
    %c0_164 = arith.constant 0 : index
    %c2_165 = arith.constant 2 : index
    %c0_166 = arith.constant 0 : index
    %c0_167 = arith.constant 0 : index
    %166 = vector.load %arg2[%c0_164, %c2_165, %c0_166, %c0_167] : memref<2x4x8x128xf32, #tpu.memory_space<vmem>>, vector<1x1x8x128xf32>
    %167 = vector.shape_cast %166 : vector<1x1x8x128xf32> to vector<8x128xf32>
    %168 = vector.shape_cast %164 : vector<8x128xf32> to vector<1x1x8x128xf32>
    tpu.vector_store %arg2[%c0_164, %c2_165, %c0_166, %c0_167], %168 {strides = array<i32>} : memref<2x4x8x128xf32, #tpu.memory_space<vmem>>, vector<1x1x8x128xf32>,
    %c1_168 = arith.constant 1 : index
    %c2_169 = arith.constant 2 : index
    %c0_170 = arith.constant 0 : index
    %c0_171 = arith.constant 0 : index
    %169 = vector.load %arg2[%c1_168, %c2_169, %c0_170, %c0_171] : memref<2x4x8x128xf32, #tpu.memory_space<vmem>>, vector<1x1x8x128xf32>
    %170 = vector.shape_cast %169 : vector<1x1x8x128xf32> to vector<8x128xf32>
    %171 = vector.shape_cast %165 : vector<8x128xf32> to vector<1x1x8x128xf32>
    tpu.vector_store %arg2[%c1_168, %c2_169, %c0_170, %c0_171], %171 {strides = array<i32>} : memref<2x4x8x128xf32, #tpu.memory_space<vmem>>, vector<1x1x8x128xf32>,
    %c0_172 = arith.constant 0 : index
    %c0_173 = arith.constant 0 : index
    %c3_174 = arith.constant 3 : index
    %c0_175 = arith.constant 0 : index
    %c0_176 = arith.constant 0 : index
    %172 = vector.load %arg1[%c0_172, %c0_173, %c3_174, %c0_175, %c0_176] : memref<2x4x4x8x128xf32, #tpu.memory_space<vmem>>, vector<1x1x1x8x128xf32>
    %173 = vector.shape_cast %172 : vector<1x1x1x8x128xf32> to vector<8x128xf32>
    %c1_177 = arith.constant 1 : index
    %c0_178 = arith.constant 0 : index
    %c3_179 = arith.constant 3 : index
    %c0_180 = arith.constant 0 : index
    %c0_181 = arith.constant 0 : index
    %174 = vector.load %arg1[%c1_177, %c0_178, %c3_179, %c0_180, %c0_181] : memref<2x4x4x8x128xf32, #tpu.memory_space<vmem>>, vector<1x1x1x8x128xf32>
    %175 = vector.shape_cast %174 : vector<1x1x1x8x128xf32> to vector<8x128xf32>
    %176 = arith.mulf %1, %173 : vector<8x128xf32>
    %177 = arith.mulf %9, %175 : vector<8x128xf32>
    %178 = arith.subf %176, %177 : vector<8x128xf32>
    %179 = arith.mulf %1, %175 : vector<8x128xf32>
    %180 = arith.mulf %9, %173 : vector<8x128xf32>
    %181 = arith.addf %179, %180 : vector<8x128xf32>
    %c0_182 = arith.constant 0 : index
    %c1_183 = arith.constant 1 : index
    %c3_184 = arith.constant 3 : index
    %c0_185 = arith.constant 0 : index
    %c0_186 = arith.constant 0 : index
    %182 = vector.load %arg1[%c0_182, %c1_183, %c3_184, %c0_185, %c0_186] : memref<2x4x4x8x128xf32, #tpu.memory_space<vmem>>, vector<1x1x1x8x128xf32>
    %183 = vector.shape_cast %182 : vector<1x1x1x8x128xf32> to vector<8x128xf32>
    %c1_187 = arith.constant 1 : index
    %c1_188 = arith.constant 1 : index
    %c3_189 = arith.constant 3 : index
    %c0_190 = arith.constant 0 : index
    %c0_191 = arith.constant 0 : index
    %184 = vector.load %arg1[%c1_187, %c1_188, %c3_189, %c0_190, %c0_191] : memref<2x4x4x8x128xf32, #tpu.memory_space<vmem>>, vector<1x1x1x8x128xf32>
    %185 = vector.shape_cast %184 : vector<1x1x1x8x128xf32> to vector<8x128xf32>
    %186 = arith.mulf %3, %183 : vector<8x128xf32>
    %187 = arith.mulf %11, %185 : vector<8x128xf32>
    %188 = arith.subf %186, %187 : vector<8x128xf32>
    %189 = arith.mulf %3, %185 : vector<8x128xf32>
    %190 = arith.mulf %11, %183 : vector<8x128xf32>
    %191 = arith.addf %189, %190 : vector<8x128xf32>
    %192 = arith.addf %178, %188 : vector<8x128xf32>
    %193 = arith.addf %181, %191 : vector<8x128xf32>
    %c0_192 = arith.constant 0 : index
    %c2_193 = arith.constant 2 : index
    %c3_194 = arith.constant 3 : index
    %c0_195 = arith.constant 0 : index
    %c0_196 = arith.constant 0 : index
    %194 = vector.load %arg1[%c0_192, %c2_193, %c3_194, %c0_195, %c0_196] : memref<2x4x4x8x128xf32, #tpu.memory_space<vmem>>, vector<1x1x1x8x128xf32>
    %195 = vector.shape_cast %194 : vector<1x1x1x8x128xf32> to vector<8x128xf32>
    %c1_197 = arith.constant 1 : index
    %c2_198 = arith.constant 2 : index
    %c3_199 = arith.constant 3 : index
    %c0_200 = arith.constant 0 : index
    %c0_201 = arith.constant 0 : index
    %196 = vector.load %arg1[%c1_197, %c2_198, %c3_199, %c0_200, %c0_201] : memref<2x4x4x8x128xf32, #tpu.memory_space<vmem>>, vector<1x1x1x8x128xf32>
    %197 = vector.shape_cast %196 : vector<1x1x1x8x128xf32> to vector<8x128xf32>
    %198 = arith.mulf %5, %195 : vector<8x128xf32>
    %199 = arith.mulf %13, %197 : vector<8x128xf32>
    %200 = arith.subf %198, %199 : vector<8x128xf32>
    %201 = arith.mulf %5, %197 : vector<8x128xf32>
    %202 = arith.mulf %13, %195 : vector<8x128xf32>
    %203 = arith.addf %201, %202 : vector<8x128xf32>
    %204 = arith.addf %192, %200 : vector<8x128xf32>
    %205 = arith.addf %193, %203 : vector<8x128xf32>
    %c0_202 = arith.constant 0 : index
    %c3_203 = arith.constant 3 : index
    %c3_204 = arith.constant 3 : index
    %c0_205 = arith.constant 0 : index
    %c0_206 = arith.constant 0 : index
    %206 = vector.load %arg1[%c0_202, %c3_203, %c3_204, %c0_205, %c0_206] : memref<2x4x4x8x128xf32, #tpu.memory_space<vmem>>, vector<1x1x1x8x128xf32>
    %207 = vector.shape_cast %206 : vector<1x1x1x8x128xf32> to vector<8x128xf32>
    %c1_207 = arith.constant 1 : index
    %c3_208 = arith.constant 3 : index
    %c3_209 = arith.constant 3 : index
    %c0_210 = arith.constant 0 : index
    %c0_211 = arith.constant 0 : index
    %208 = vector.load %arg1[%c1_207, %c3_208, %c3_209, %c0_210, %c0_211] : memref<2x4x4x8x128xf32, #tpu.memory_space<vmem>>, vector<1x1x1x8x128xf32>
    %209 = vector.shape_cast %208 : vector<1x1x1x8x128xf32> to vector<8x128xf32>
    %210 = arith.mulf %7, %207 : vector<8x128xf32>
    %211 = arith.mulf %15, %209 : vector<8x128xf32>
    %212 = arith.subf %210, %211 : vector<8x128xf32>
    %213 = arith.mulf %7, %209 : vector<8x128xf32>
    %214 = arith.mulf %15, %207 : vector<8x128xf32>
    %215 = arith.addf %213, %214 : vector<8x128xf32>
    %216 = arith.addf %204, %212 : vector<8x128xf32>
    %217 = arith.addf %205, %215 : vector<8x128xf32>
    %c0_212 = arith.constant 0 : index
    %c3_213 = arith.constant 3 : index
    %c0_214 = arith.constant 0 : index
    %c0_215 = arith.constant 0 : index
    %218 = vector.load %arg2[%c0_212, %c3_213, %c0_214, %c0_215] : memref<2x4x8x128xf32, #tpu.memory_space<vmem>>, vector<1x1x8x128xf32>
    %219 = vector.shape_cast %218 : vector<1x1x8x128xf32> to vector<8x128xf32>
    %220 = vector.shape_cast %216 : vector<8x128xf32> to vector<1x1x8x128xf32>
    tpu.vector_store %arg2[%c0_212, %c3_213, %c0_214, %c0_215], %220 {strides = array<i32>} : memref<2x4x8x128xf32, #tpu.memory_space<vmem>>, vector<1x1x8x128xf32>,
    %c1_216 = arith.constant 1 : index
    %c3_217 = arith.constant 3 : index
    %c0_218 = arith.constant 0 : index
    %c0_219 = arith.constant 0 : index
    %221 = vector.load %arg2[%c1_216, %c3_217, %c0_218, %c0_219] : memref<2x4x8x128xf32, #tpu.memory_space<vmem>>, vector<1x1x8x128xf32>
    %222 = vector.shape_cast %221 : vector<1x1x8x128xf32> to vector<8x128xf32>
    %223 = vector.shape_cast %217 : vector<8x128xf32> to vector<1x1x8x128xf32>
    tpu.vector_store %arg2[%c1_216, %c3_217, %c0_218, %c0_219], %223 {strides = array<i32>} : memref<2x4x8x128xf32, #tpu.memory_space<vmem>>, vector<1x1x8x128xf32>,
    return
  }
}

</mosaic_0001>

<bundles_post_ra>
// kernel: _lambda_.1
= control target key start
LH: loop header
LB: loop body
LE: loop exit
PB: predicated region body
PF: predicated region fallthrough
CT: control target
= control target key end

     0   :  { %s512_s0 = inlined_call_operand.vmem [shape: f32[2,4,8,128], index: 0, kind: input, shape index: {}]   ;;  %s513_s1 = inlined_call_operand.vmem [shape: f32[2,4,4,8,128], index: 1, kind: input, shape index: {}]   ;;  %s514_s2 = inlined_call_operand.vmem [shape: f32[2,4,8,128], index: 2, kind: output, shape index: {}]  }
   0x1   :  { %v291_v0 = vld [vmem:[%s512_s0] sm:$0xff]  ;;  %v296_v1 = vld [vmem:[%s512_s0 + $0x8] sm:$0xff]  ;;  %v301_v2 = vld [vmem:[%s512_s0 + $0x10] sm:$0xff] }
   0x2   :  { %v306_v3 = vld [vmem:[%s512_s0 + $0x18] sm:$0xff]  ;;  %v311_v4 = vld [vmem:[%s512_s0 + $0x20] sm:$0xff]  ;;  %v316_v5 = vld [vmem:[%s512_s0 + $0x28] sm:$0xff] }
   0x3   :  { %v321_v6 = vld [vmem:[%s512_s0 + $0x30] sm:$0xff]  ;;  %v326_v7 = vld [vmem:[%s512_s0 + $0x38] sm:$0xff]  ;;  %v26_v8 = vld [vmem:[%s513_s1] sm:$0xff] }
   0x4   :  { %v235_v9 = vld [vmem:[%s513_s1 + $0x80] sm:$0xff]  ;;  %v29_v10 = vmul.f32 %v26_v8, %v291_v0  ;;  %v33_v13 = vmul.f32 %v311_v4, %v26_v8  ;;  %v243_v30 = vld [vmem:[%s513_s1 + $0x8] sm:$0xff] }
   0x5   :  { %v236_v11 = vld [vmem:[%s513_s1 + $0x20] sm:$0xff]  ;;  %v30_v14 = vmul.f32 %v235_v9, %v311_v4  ;;  %v32_v20 = vmul.f32 %v235_v9, %v291_v0  ;;  %v244_v31 = vld [vmem:[%s513_s1 + $0x88] sm:$0xff]  ;;  %v78_v46 = vmul.f32 %v243_v30, %v291_v0  ;;  %v82_v9 = vmul.f32 %v243_v30, %v311_v4 }
   0x6   :  { %v237_v12 = vld [vmem:[%s513_s1 + $0xa0] sm:$0xff]  ;;  %v39_v15 = vmul.f32 %v236_v11, %v296_v1  ;;  %v43_v33 = vmul.f32 %v236_v11, %v316_v5  ;;  %v245_v36 = vld [vmem:[%s513_s1 + $0x28] sm:$0xff]  ;;  %v79_v47 = vmul.f32 %v244_v31, %v311_v4  ;;  %v81_v8 = vmul.f32 %v244_v31, %v291_v0 }
   0x7   :  { %v40_v16 = vmul.f32 %v237_v12, %v316_v5  ;;  %v238_v17 = vld [vmem:[%s513_s1 + $0x40] sm:$0xff]  ;;  %v42_v25 = vmul.f32 %v237_v12, %v296_v1  ;;  %v31_v26 = vsub.f32 %v29_v10, %v30_v14  ;;  %v34_v29 = vadd.f32 %v33_v13, %v32_v20  ;;  %v246_v37 = vld [vmem:[%s513_s1 + $0xa8] sm:$0xff]  ;;  %v253_v14 = vld [vmem:[%s513_s1 + $0x10] sm:$0xff] }
   0x8   :  { %v239_v18 = vld [vmem:[%s513_s1 + $0xc0] sm:$0xff]  ;;  %v51_v21 = vmul.f32 %v238_v17, %v301_v2  ;;  %v55_v35 = vmul.f32 %v238_v17, %v321_v6  ;;  %v247_v42 = vld [vmem:[%s513_s1 + $0x48] sm:$0xff]  ;;  %v88_v52 = vmul.f32 %v245_v36, %v296_v1  ;;  %v89_v53 = vmul.f32 %v246_v37, %v316_v5 }
   0x9   :  { %v240_v19 = vld [vmem:[%s513_s1 + $0x60] sm:$0xff]  ;;  %v52_v22 = vmul.f32 %v239_v18, %v321_v6  ;;  %v41_v27 = vsub.f32 %v39_v15, %v40_v16  ;;  %v54_v34 = vmul.f32 %v239_v18, %v301_v2  ;;  %v248_v43 = vld [vmem:[%s513_s1 + $0xc8] sm:$0xff]  ;;  %v44_v44 = vadd.f32 %v43_v33, %v42_v25  ;;  %v254_v15 = vld [vmem:[%s513_s1 + $0x90] sm:$0xff] }
   0xa   :  { %v241_v23 = vld [vmem:[%s513_s1 + $0xe0] sm:$0xff]  ;;  %v63_v24 = vmul.f32 %v240_v19, %v306_v3  ;;  %v67_v41 = vmul.f32 %v240_v19, %v326_v7  ;;  %v249_v48 = vld [vmem:[%s513_s1 + $0x68] sm:$0xff]  ;;  %v80_v55 = vsub.f32 %v78_v46, %v79_v47  ;;  %v100_v56 = vmul.f32 %v247_v42, %v301_v2  ;;  %v255_v16 = vld [vmem:[%s513_s1 + $0x30] sm:$0xff] }
   0xb   :  { %v64_v28 = vmul.f32 %v241_v23, %v326_v7  ;;  %v53_v32 = vsub.f32 %v51_v21, %v52_v22  ;;  %v45_v38 = vadd.f32 %v41_v27, %v31_v26  ;;  %v66_v40 = vmul.f32 %v241_v23, %v306_v3  ;;  %v250_v49 = vld [vmem:[%s513_s1 + $0xe8] sm:$0xff]  ;;  %v256_v21 = vld [vmem:[%s513_s1 + $0xb0] sm:$0xff] }
   0xc   :  { %v56_v45 = vadd.f32 %v55_v35, %v54_v34  ;;  %v46_v54 = vadd.f32 %v44_v44, %v34_v29  ;;  %v101_v57 = vmul.f32 %v248_v43, %v321_v6  ;;  %v90_v59 = vsub.f32 %v88_v52, %v89_v53  ;;  %v257_v26 = vld [vmem:[%s513_s1 + $0x50] sm:$0xff] }
   0xd   :  { %v65_v39 = vsub.f32 %v63_v24, %v64_v28  ;;  %v57_v50 = vadd.f32 %v53_v32, %v45_v38  ;;  %v68_v51 = vadd.f32 %v67_v41, %v66_v40  ;;  %v112_v60 = vmul.f32 %v249_v48, %v306_v3  ;;  %v258_v27 = vld [vmem:[%s513_s1 + $0xd0] sm:$0xff] }
   0xe   :  { %v113_v61 = vmul.f32 %v250_v49, %v326_v7  ;;  %v58_v62 = vadd.f32 %v56_v45, %v46_v54  ;;  %v102_v63 = vsub.f32 %v100_v56, %v101_v57  ;;  %v94_v10 = vadd.f32 %v90_v59, %v80_v55  ;;  %v259_v28 = vld [vmem:[%s513_s1 + $0x70] sm:$0xff]  ;;  %v265_v56 = vld [vmem:[%s513_s1 + $0x38] sm:$0xff] }
   0xf   :  { %v69_v58 = vadd.f32 %v65_v39, %v57_v50  ;;  %v91_v12 = vmul.f32 %v246_v37, %v296_v1  ;;  %v92_v13 = vmul.f32 %v245_v36, %v316_v5  ;;  %v83_v18 = vadd.f32 %v82_v9, %v81_v8  ;;  %v260_v33 = vld [vmem:[%s513_s1 + $0xf0] sm:$0xff]  ;;  %v263_v50 = vld [vmem:[%s513_s1 + $0x18] sm:$0xff] }
  0x10   :  { %v114_v11 = vsub.f32 %v112_v60, %v113_v61  ;;  %v70_v17 = vadd.f32 %v68_v51, %v58_v62  ;;  %v103_v19 = vmul.f32 %v248_v43, %v301_v2  ;;  %v104_v20 = vmul.f32 %v247_v42, %v321_v6  ;;  %v264_v51 = vld [vmem:[%s513_s1 + $0x98] sm:$0xff] }
  0x11   :  { %71 = vst [vmem:[%s514_s2] sm:$0xff] %v69_v58  ;;  %v106_v22 = vadd.f32 %v102_v63, %v94_v10  ;;  %v93_v23 = vadd.f32 %v92_v13, %v91_v12  ;;  %v115_v24 = vmul.f32 %v250_v49, %v306_v3  ;;  %v116_v25 = vmul.f32 %v249_v48, %v326_v7  ;;  %v266_v57 = vld [vmem:[%s513_s1 + $0xb8] sm:$0xff] }
  0x12   :  { %242 = vst [vmem:[%s514_s2 + $0x20] sm:$0xff] %v70_v17  ;;  %v105_v29 = vadd.f32 %v104_v20, %v103_v19  ;;  %v128_v30 = vmul.f32 %v253_v14, %v291_v0  ;;  %v129_v31 = vmul.f32 %v254_v15, %v311_v4  ;;  %v138_v32 = vmul.f32 %v255_v16, %v296_v1  ;;  %v267_v62 = vld [vmem:[%s513_s1 + $0x58] sm:$0xff] }
  0x13   :  { %v118_v34 = vadd.f32 %v114_v11, %v106_v22  ;;  %v95_v35 = vadd.f32 %v93_v23, %v83_v18  ;;  %v117_v36 = vadd.f32 %v116_v25, %v115_v24  ;;  %v139_v37 = vmul.f32 %v256_v21, %v316_v5  ;;  %v268_v11 = vld [vmem:[%s513_s1 + $0xd8] sm:$0xff] }
  0x14   :  { %v130_v38 = vsub.f32 %v128_v30, %v129_v31  ;;  %v150_v39 = vmul.f32 %v257_v26, %v301_v2  ;;  %v151_v40 = vmul.f32 %v258_v27, %v321_v6  ;;  %v162_v41 = vmul.f32 %v259_v28, %v306_v3  ;;  %v269_v12 = vld [vmem:[%s513_s1 + $0x78] sm:$0xff] }
  0x15   :  { %251 = vst [vmem:[%s514_s2 + $0x8] sm:$0xff] %v118_v34  ;;  %v107_v42 = vadd.f32 %v105_v29, %v95_v35  ;;  %v140_v43 = vsub.f32 %v138_v32, %v139_v37  ;;  %v163_v44 = vmul.f32 %v260_v33, %v326_v7  ;;  %v131_v45 = vmul.f32 %v254_v15, %v291_v0  ;;  %v270_v17 = vld [vmem:[%s513_s1 + $0xf8] sm:$0xff] }
  0x16   :  { %v152_v46 = vsub.f32 %v150_v39, %v151_v40  ;;  %v132_v47 = vmul.f32 %v253_v14, %v311_v4  ;;  %v141_v48 = vmul.f32 %v256_v21, %v296_v1  ;;  %v142_v49 = vmul.f32 %v255_v16, %v316_v5 }
  0x17   :  { %v119_v52 = vadd.f32 %v117_v36, %v107_v42  ;;  %v144_v53 = vadd.f32 %v140_v43, %v130_v38  ;;  %v164_v54 = vsub.f32 %v162_v41, %v163_v44  ;;  %v153_v55 = vmul.f32 %v258_v27, %v301_v2 }
  0x18   :  { %v133_v58 = vadd.f32 %v132_v47, %v131_v45  ;;  %v143_v59 = vadd.f32 %v142_v49, %v141_v48  ;;  %v154_v60 = vmul.f32 %v257_v26, %v321_v6  ;;  %v165_v61 = vmul.f32 %v260_v33, %v306_v3 }
  0x19   :  { %252 = vst [vmem:[%s514_s2 + $0x28] sm:$0xff] %v119_v52  ;;  %v156_v63 = vadd.f32 %v152_v46, %v144_v53  ;;  %v166_v8 = vmul.f32 %v259_v28, %v326_v7  ;;  %v178_v9 = vmul.f32 %v263_v50, %v291_v0  ;;  %v179_v10 = vmul.f32 %v264_v51, %v311_v4 }
  0x1a   :  { %v145_v13 = vadd.f32 %v143_v59, %v133_v58  ;;  %v155_v14 = vadd.f32 %v154_v60, %v153_v55  ;;  %v188_v15 = vmul.f32 %v265_v56, %v296_v1  ;;  %v189_v16 = vmul.f32 %v266_v57, %v316_v5 }
  0x1b   :  { %v168_v18 = vadd.f32 %v164_v54, %v156_v63  ;;  %v167_v19 = vadd.f32 %v166_v8, %v165_v61  ;;  %v180_v20 = vsub.f32 %v178_v9, %v179_v10  ;;  %v200_v21 = vmul.f32 %v267_v62, %v301_v2 }
  0x1c   :  { %v157_v22 = vadd.f32 %v155_v14, %v145_v13  ;;  %v190_v23 = vsub.f32 %v188_v15, %v189_v16  ;;  %v201_v24 = vmul.f32 %v268_v11, %v321_v6  ;;  %v212_v25 = vmul.f32 %v269_v12, %v306_v3 }
  0x1d   :  { %261 = vst [vmem:[%s514_s2 + $0x10] sm:$0xff] %v168_v18  ;;  %v213_v26 = vmul.f32 %v270_v17, %v326_v7  ;;  %v181_v27 = vmul.f32 %v264_v51, %v291_v0  ;;  %v182_v28 = vmul.f32 %v263_v50, %v311_v4  ;;  %v191_v29 = vmul.f32 %v266_v57, %v296_v1 }
  0x1e   :  { %v169_v30 = vadd.f32 %v167_v19, %v157_v22  ;;  %v194_v31 = vadd.f32 %v190_v23, %v180_v20  ;;  %v202_v32 = vsub.f32 %v200_v21, %v201_v24  ;;  %v192_v33 = vmul.f32 %v265_v56, %v316_v5 }
  0x1f   :  { %v214_v34 = vsub.f32 %v212_v25, %v213_v26  ;;  %v183_v35 = vadd.f32 %v182_v28, %v181_v27  ;;  %v203_v36 = vmul.f32 %v268_v11, %v301_v2  ;;  %v204_v37 = vmul.f32 %v267_v62, %v321_v6 }
  0x20   :  { %262 = vst [vmem:[%s514_s2 + $0x30] sm:$0xff] %v169_v30  ;;  %v206_v0 = vadd.f32 %v202_v32, %v194_v31  ;;  %v193_v38 = vadd.f32 %v192_v33, %v191_v29  ;;  %v215_v4 = vmul.f32 %v270_v17, %v306_v3  ;;  %v216_v1 = vmul.f32 %v269_v12, %v326_v7 }
  0x21   :  { %v205_v39 = vadd.f32 %v204_v37, %v203_v36 }
  0x22   :  { %v218_v40 = vadd.f32 %v214_v34, %v206_v0  ;;  %v195_v41 = vadd.f32 %v193_v38, %v183_v35  ;;  %v217_v5 = vadd.f32 %v216_v1, %v215_v4 }
  0x24   :  { %271 = vst [vmem:[%s514_s2 + $0x18] sm:$0xff] %v218_v40  ;;  %v207_v2 = vadd.f32 %v205_v39, %v195_v41 }
  0x26   :  { %v219_v6 = vadd.f32 %v217_v5, %v207_v2 }
  0x28   :  { %272 = vst [vmem:[%s514_s2 + $0x38] sm:$0xff] %v219_v6 }

// kernel: reverse.1
= control target key start
LH: loop header
LB: loop body
LE: loop exit
PB: predicated region body
PF: predicated region fallthrough
CT: control target
= control target key end

     0   :  { %v167_v12 = vlaneseq  ;;  %v160_v34 = vld [vmem:[#allocation0 + $0x7] ss:$-1 sm:$0xff]  ;;  %v174_v37 = vld [vmem:[#allocation0 + $0x17] ss:$-1 sm:$0xff]  ;;  %s1132_s0 = inlined_call_operand.vmem [shape: f32[2,4,4,16,7], index: 0, kind: input, shape index: {}]   ;;  %s1133_s1 = inlined_call_operand.vmem [shape: f32[2,4,4,16,7], index: 1, kind: output, shape index: {}]  }
   0x1   :  { %v92_v0 = vld [vmem:[%s1132_s0] sm:$0xff]  ;;  %v94_v1 = vld [vmem:[%s1132_s0 + $0x8] sm:$0xff]  ;;  %v96_v2 = vld [vmem:[%s1132_s0 + $0x10] sm:$0xff]  ;;  %v161_v35 = vrot.slane %v160_v34, 1  ;;  %v175_v39 = vrot.slane %v174_v37, 1 }
   0x2   :  { %93 = vst [vmem:[#allocation0 + $0x8] sm:$0xff] %v92_v0  ;;  %95 = vst [vmem:[#allocation0 + $0x18] sm:$0xff] %v94_v1  ;;  %v98_v3 = vld [vmem:[%s1132_s0 + $0x18] sm:$0xff]  ;;  %v100_v4 = vld [vmem:[%s1132_s0 + $0x20] sm:$0xff]  ;;  %v945_v25 = vshrl.u32 %v167_v12, 7 }
   0x3   :  { %97 = vst [vmem:[#allocation0 + $0x28] sm:$0xff] %v96_v2  ;;  %v102_v5 = vld [vmem:[%s1132_s0 + $0x28] sm:$0xff]  ;;  %99 = vst [vmem:[#allocation0 + $0x38] sm:$0xff] %v98_v3  ;;  %v104_v6 = vld [vmem:[%s1132_s0 + $0x30] sm:$0xff] }
   0x4   :  { %101 = vst [vmem:[#allocation0 + $0x48] sm:$0xff] %v100_v4  ;;  %103 = vst [vmem:[#allocation0 + $0x58] sm:$0xff] %v102_v5  ;;  %v106_v7 = vld [vmem:[%s1132_s0 + $0x38] sm:$0xff]  ;;  %v108_v8 = vld [vmem:[%s1132_s0 + $0x40] sm:$0xff]  ;;  %vm169_vm0 = vcmp.lt.s32.totalorder %v945_v25, 7 }
   0x5   :  { %105 = vst [vmem:[#allocation0 + $0x68] sm:$0xff] %v104_v6  ;;  %107 = vst [vmem:[#allocation0 + $0x78] sm:$0xff] %v106_v7  ;;  %v110_v9 = vld [vmem:[%s1132_s0 + $0x48] sm:$0xff]  ;;  %v112_v10 = vld [vmem:[%s1132_s0 + $0x50] sm:$0xff] }
   0x6   :  { %109 = vst [vmem:[#allocation0 + $0x88] sm:$0xff] %v108_v8  ;;  %v114_v11 = vld [vmem:[%s1132_s0 + $0x58] sm:$0xff]  ;;  %111 = vst [vmem:[#allocation0 + $0x98] sm:$0xff] %v110_v9  ;;  %v116_v13 = vld [vmem:[%s1132_s0 + $0x60] sm:$0xff] }
   0x7   :  { %113 = vst [vmem:[#allocation0 + $0xa8] sm:$0xff] %v112_v10  ;;  %115 = vst [vmem:[#allocation0 + $0xb8] sm:$0xff] %v114_v11  ;;  %v118_v14 = vld [vmem:[%s1132_s0 + $0x68] sm:$0xff]  ;;  %v120_v15 = vld [vmem:[%s1132_s0 + $0x70] sm:$0xff] }
   0x8   :  { %117 = vst [vmem:[#allocation0 + $0xc8] sm:$0xff] %v116_v13  ;;  %119 = vst [vmem:[#allocation0 + $0xd8] sm:$0xff] %v118_v14  ;;  %v122_v16 = vld [vmem:[%s1132_s0 + $0x78] sm:$0xff]  ;;  %v124_v17 = vld [vmem:[%s1132_s0 + $0x80] sm:$0xff] }
   0x9   :  { %121 = vst [vmem:[#allocation0 + $0xe8] sm:$0xff] %v120_v15  ;;  %v126_v18 = vld [vmem:[%s1132_s0 + $0x88] sm:$0xff]  ;;  %123 = vst [vmem:[#allocation0 + $0xf8] sm:$0xff] %v122_v16  ;;  %v128_v19 = vld [vmem:[%s1132_s0 + $0x90] sm:$0xff] }
   0xa   :  { %125 = vst [vmem:[#allocation0 + $0x108] sm:$0xff] %v124_v17  ;;  %127 = vst [vmem:[#allocation0 + $0x118] sm:$0xff] %v126_v18  ;;  %v130_v20 = vld [vmem:[%s1132_s0 + $0x98] sm:$0xff]  ;;  %v132_v21 = vld [vmem:[%s1132_s0 + $0xa0] sm:$0xff] }
   0xb   :  { %129 = vst [vmem:[#allocation0 + $0x128] sm:$0xff] %v128_v19  ;;  %131 = vst [vmem:[#allocation0 + $0x138] sm:$0xff] %v130_v20  ;;  %v134_v22 = vld [vmem:[%s1132_s0 + $0xa8] sm:$0xff]  ;;  %v136_v23 = vld [vmem:[%s1132_s0 + $0xb0] sm:$0xff] }
   0xc   :  { %133 = vst [vmem:[#allocation0 + $0x148] sm:$0xff] %v132_v21  ;;  %v138_v24 = vld [vmem:[%s1132_s0 + $0xb8] sm:$0xff]  ;;  %135 = vst [vmem:[#allocation0 + $0x158] sm:$0xff] %v134_v22  ;;  %v140_v26 = vld [vmem:[%s1132_s0 + $0xc0] sm:$0xff] }
   0xd   :  { %137 = vst [vmem:[#allocation0 + $0x168] sm:$0xff] %v136_v23  ;;  %139 = vst [vmem:[#allocation0 + $0x178] sm:$0xff] %v138_v24  ;;  %v142_v27 = vld [vmem:[%s1132_s0 + $0xc8] sm:$0xff]  ;;  %v144_v28 = vld [vmem:[%s1132_s0 + $0xd0] sm:$0xff] }
   0xe   :  { %141 = vst [vmem:[#allocation0 + $0x188] sm:$0xff] %v140_v26  ;;  %143 = vst [vmem:[#allocation0 + $0x198] sm:$0xff] %v142_v27  ;;  %v146_v29 = vld [vmem:[%s1132_s0 + $0xd8] sm:$0xff]  ;;  %v148_v30 = vld [vmem:[%s1132_s0 + $0xe0] sm:$0xff] }
   0xf   :  { %145 = vst [vmem:[#allocation0 + $0x1a8] sm:$0xff] %v144_v28  ;;  %v150_v31 = vld [vmem:[%s1132_s0 + $0xe8] sm:$0xff]  ;;  %147 = vst [vmem:[#allocation0 + $0x1b8] sm:$0xff] %v146_v29  ;;  %v152_v32 = vld [vmem:[%s1132_s0 + $0xf0] sm:$0xff] }
  0x10   :  { %149 = vst [vmem:[#allocation0 + $0x1c8] sm:$0xff] %v148_v30  ;;  %151 = vst [vmem:[#allocation0 + $0x1d8] sm:$0xff] %v150_v31  ;;  %v154_v33 = vld [vmem:[%s1132_s0 + $0xf8] sm:$0xff]  ;;  %v165_v36 = vld [vmem:[#allocation0 + $0xf] ss:$-1 sm:$0xff] }
  0x11   :  { %153 = vst [vmem:[#allocation0 + $0x1e8] sm:$0xff] %v152_v32  ;;  %155 = vst [vmem:[#allocation0 + $0x1f8] sm:$0xff] %v154_v33  ;;  %v166_v38 = vrot.slane %v165_v36, 1  ;;  %v179_v40 = vld [vmem:[#allocation0 + $0x1f] ss:$-1 sm:$0xff] }
  0x12   :  { %v188_v41 = vld [vmem:[#allocation0 + $0x27] ss:$-1 sm:$0xff]  ;;  %162 = vst [vmem:[#allocation1] sm:$0xff] %v161_v35  ;;  %v180_v42 = vrot.slane %v179_v40, 1  ;;  %v193_v44 = vld [vmem:[#allocation0 + $0x2f] ss:$-1 sm:$0xff] }
  0x13   :  { %v189_v43 = vrot.slane %v188_v41, 1  ;;  %v202_v45 = vld [vmem:[#allocation0 + $0x37] ss:$-1 sm:$0xff]  ;;  %170 = vst.msk [vmem:[#allocation1] sm:$0xff] %vm169_vm0, %v166_v38  ;;  %176 = vst [vmem:[#allocation1 + $0x8] sm:$0xff] %v175_v39  ;;  %v194_v46 = vrot.slane %v193_v44, 1 }
  0x14   :  { %v203_v47 = vrot.slane %v202_v45, 1  ;;  %v207_v48 = vld [vmem:[#allocation0 + $0x3f] ss:$-1 sm:$0xff]  ;;  %v216_v49 = vld [vmem:[#allocation0 + $0x47] ss:$-1 sm:$0xff]  ;;  %184 = vst.msk [vmem:[#allocation1 + $0x8] sm:$0xff] %vm169_vm0, %v180_v42 }
  0x15   :  { %190 = vst [vmem:[#allocation1 + $0x10] sm:$0xff] %v189_v43  ;;  %v208_v50 = vrot.slane %v207_v48, 1  ;;  %v217_v51 = vrot.slane %v216_v49, 1  ;;  %v221_v52 = vld [vmem:[#allocation0 + $0x4f] ss:$-1 sm:$0xff] }
  0x16   :  { %v230_v53 = vld [vmem:[#allocation0 + $0x57] ss:$-1 sm:$0xff]  ;;  %198 = vst.msk [vmem:[#allocation1 + $0x10] sm:$0xff] %vm169_vm0, %v194_v46  ;;  %204 = vst [vmem:[#allocation1 + $0x18] sm:$0xff] %v203_v47  ;;  %v222_v54 = vrot.slane %v221_v52, 1 }
  0x17   :  { %v231_v55 = vrot.slane %v230_v53, 1  ;;  %v235_v56 = vld [vmem:[#allocation0 + $0x5f] ss:$-1 sm:$0xff]  ;;  %v244_v57 = vld [vmem:[#allocation0 + $0x67] ss:$-1 sm:$0xff]  ;;  %212 = vst.msk [vmem:[#allocation1 + $0x18] sm:$0xff] %vm169_vm0, %v208_v50 }
  0x18   :  { %218 = vst [vmem:[#allocation1 + $0x20] sm:$0xff] %v217_v51  ;;  %v236_v58 = vrot.slane %v235_v56, 1  ;;  %v245_v59 = vrot.slane %v244_v57, 1  ;;  %v249_v60 = vld [vmem:[#allocation0 + $0x6f] ss:$-1 sm:$0xff] }
  0x19   :  { %v258_v61 = vld [vmem:[#allocation0 + $0x77] ss:$-1 sm:$0xff]  ;;  %226 = vst.msk [vmem:[#allocation1 + $0x20] sm:$0xff] %vm169_vm0, %v222_v54  ;;  %232 = vst [vmem:[#allocation1 + $0x28] sm:$0xff] %v231_v55  ;;  %v250_v62 = vrot.slane %v249_v60, 1 }
  0x1a   :  { %v259_v63 = vrot.slane %v258_v61, 1  ;;  %v263_v0 = vld [vmem:[#allocation0 + $0x7f] ss:$-1 sm:$0xff]  ;;  %v272_v1 = vld [vmem:[#allocation0 + $0x87] ss:$-1 sm:$0xff]  ;;  %240 = vst.msk [vmem:[#allocation1 + $0x28] sm:$0xff] %vm169_vm0, %v236_v58 }
  0x1b   :  { %246 = vst [vmem:[#allocation1 + $0x30] sm:$0xff] %v245_v59  ;;  %v264_v2 = vrot.slane %v263_v0, 1  ;;  %v273_v3 = vrot.slane %v272_v1, 1  ;;  %v277_v4 = vld [vmem:[#allocation0 + $0x8f] ss:$-1 sm:$0xff] }
  0x1c   :  { %v286_v5 = vld [vmem:[#allocation0 + $0x97] ss:$-1 sm:$0xff]  ;;  %254 = vst.msk [vmem:[#allocation1 + $0x30] sm:$0xff] %vm169_vm0, %v250_v62  ;;  %260 = vst [vmem:[#allocation1 + $0x38] sm:$0xff] %v259_v63  ;;  %v278_v6 = vrot.slane %v277_v4, 1 }
  0x1d   :  { %v287_v7 = vrot.slane %v286_v5, 1  ;;  %v291_v8 = vld [vmem:[#allocation0 + $0x9f] ss:$-1 sm:$0xff]  ;;  %v300_v9 = vld [vmem:[#allocation0 + $0xa7] ss:$-1 sm:$0xff]  ;;  %268 = vst.msk [vmem:[#allocation1 + $0x38] sm:$0xff] %vm169_vm0, %v264_v2 }
  0x1e   :  { %274 = vst [vmem:[#allocation1 + $0x40] sm:$0xff] %v273_v3  ;;  %v292_v10 = vrot.slane %v291_v8, 1  ;;  %v301_v11 = vrot.slane %v300_v9, 1  ;;  %v305_v12 = vld [vmem:[#allocation0 + $0xaf] ss:$-1 sm:$0xff] }
  0x1f   :  { %v314_v13 = vld [vmem:[#allocation0 + $0xb7] ss:$-1 sm:$0xff]  ;;  %282 = vst.msk [vmem:[#allocation1 + $0x40] sm:$0xff] %vm169_vm0, %v278_v6  ;;  %288 = vst [vmem:[#allocation1 + $0x48] sm:$0xff] %v287_v7  ;;  %v306_v14 = vrot.slane %v305_v12, 1 }
  0x20   :  { %v315_v15 = vrot.slane %v314_v13, 1  ;;  %v319_v16 = vld [vmem:[#allocation0 + $0xbf] ss:$-1 sm:$0xff]  ;;  %v328_v17 = vld [vmem:[#allocation0 + $0xc7] ss:$-1 sm:$0xff]  ;;  %296 = vst.msk [vmem:[#allocation1 + $0x48] sm:$0xff] %vm169_vm0, %v292_v10 }
  0x21   :  { %302 = vst [vmem:[#allocation1 + $0x50] sm:$0xff] %v301_v11  ;;  %v320_v18 = vrot.slane %v319_v16, 1  ;;  %v329_v19 = vrot.slane %v328_v17, 1  ;;  %v333_v20 = vld [vmem:[#allocation0 + $0xcf] ss:$-1 sm:$0xff] }
  0x22   :  { %v342_v21 = vld [vmem:[#allocation0 + $0xd7] ss:$-1 sm:$0xff]  ;;  %310 = vst.msk [vmem:[#allocation1 + $0x50] sm:$0xff] %vm169_vm0, %v306_v14  ;;  %316 = vst [vmem:[#allocation1 + $0x58] sm:$0xff] %v315_v15  ;;  %v334_v22 = vrot.slane %v333_v20, 1 }
  0x23   :  { %v343_v23 = vrot.slane %v342_v21, 1  ;;  %v347_v24 = vld [vmem:[#allocation0 + $0xdf] ss:$-1 sm:$0xff]  ;;  %v356_v26 = vld [vmem:[#allocation0 + $0xe7] ss:$-1 sm:$0xff]  ;;  %324 = vst.msk [vmem:[#allocation1 + $0x58] sm:$0xff] %vm169_vm0, %v320_v18 }
  0x24   :  { %330 = vst [vmem:[#allocation1 + $0x60] sm:$0xff] %v329_v19  ;;  %v348_v27 = vrot.slane %v347_v24, 1  ;;  %v357_v28 = vrot.slane %v356_v26, 1  ;;  %v361_v29 = vld [vmem:[#allocation0 + $0xef] ss:$-1 sm:$0xff] }
  0x25   :  { %v370_v30 = vld [vmem:[#allocation0 + $0xf7] ss:$-1 sm:$0xff]  ;;  %338 = vst.msk [vmem:[#allocation1 + $0x60] sm:$0xff] %vm169_vm0, %v334_v22  ;;  %344 = vst [vmem:[#allocation1 + $0x68] sm:$0xff] %v343_v23  ;;  %v362_v31 = vrot.slane %v361_v29, 1 }
  0x26   :  { %v371_v32 = vrot.slane %v370_v30, 1  ;;  %v375_v33 = vld [vmem:[#allocation0 + $0xff] ss:$-1 sm:$0xff]  ;;  %v384_v34 = vld [vmem:[#allocation0 + $0x107] ss:$-1 sm:$0xff]  ;;  %352 = vst.msk [vmem:[#allocation1 + $0x68] sm:$0xff] %vm169_vm0, %v348_v27 }
  0x27   :  { %358 = vst [vmem:[#allocation1 + $0x70] sm:$0xff] %v357_v28  ;;  %v376_v35 = vrot.slane %v375_v33, 1  ;;  %v385_v36 = vrot.slane %v384_v34, 1  ;;  %v389_v37 = vld [vmem:[#allocation0 + $0x10f] ss:$-1 sm:$0xff]  ;;  %v710_v25 = vld [vmem:[#allocation1 + $0x40] sm:$0xff] }
  0x28   :  { %v398_v38 = vld [vmem:[#allocation0 + $0x117] ss:$-1 sm:$0xff]  ;;  %366 = vst.msk [vmem:[#allocation1 + $0x70] sm:$0xff] %vm169_vm0, %v362_v31  ;;  %372 = vst [vmem:[#allocation1 + $0x78] sm:$0xff] %v371_v32  ;;  %v390_v39 = vrot.slane %v389_v37, 1 }
  0x29   :  { %v399_v40 = vrot.slane %v398_v38, 1  ;;  %v403_v41 = vld [vmem:[#allocation0 + $0x11f] ss:$-1 sm:$0xff]  ;;  %v412_v42 = vld [vmem:[#allocation0 + $0x127] ss:$-1 sm:$0xff]  ;;  %380 = vst.msk [vmem:[#allocation1 + $0x78] sm:$0xff] %vm169_vm0, %v376_v35 }
  0x2a   :  { %386 = vst [vmem:[#allocation1 + $0x80] sm:$0xff] %v385_v36  ;;  %v404_v43 = vrot.slane %v403_v41, 1  ;;  %v413_v44 = vrot.slane %v412_v42, 1  ;;  %v417_v45 = vld [vmem:[#allocation0 + $0x12f] ss:$-1 sm:$0xff]  ;;  %v694_v35 = vld [vmem:[#allocation1] sm:$0xff] }
  0x2b   :  { %v426_v46 = vld [vmem:[#allocation0 + $0x137] ss:$-1 sm:$0xff]  ;;  %394 = vst.msk [vmem:[#allocation1 + $0x80] sm:$0xff] %vm169_vm0, %v390_v39  ;;  %400 = vst [vmem:[#allocation1 + $0x88] sm:$0xff] %v399_v40  ;;  %v418_v47 = vrot.slane %v417_v45, 1  ;;  %v696_v36 = vld [vmem:[#allocation1 + $0x8] sm:$0xff] }
  0x2c   :  { %v427_v48 = vrot.slane %v426_v46, 1  ;;  %v431_v49 = vld [vmem:[#allocation0 + $0x13f] ss:$-1 sm:$0xff]  ;;  %v440_v50 = vld [vmem:[#allocation0 + $0x147] ss:$-1 sm:$0xff]  ;;  %408 = vst.msk [vmem:[#allocation1 + $0x88] sm:$0xff] %vm169_vm0, %v404_v43  ;;  %695 = vst [vmem:[%s1133_s1] sm:$0xff] %v694_v35 }
  0x2d   :  { %414 = vst [vmem:[#allocation1 + $0x90] sm:$0xff] %v413_v44  ;;  %v432_v51 = vrot.slane %v431_v49, 1  ;;  %v441_v52 = vrot.slane %v440_v50, 1  ;;  %v445_v53 = vld [vmem:[#allocation0 + $0x14f] ss:$-1 sm:$0xff]  ;;  %697 = vst [vmem:[%s1133_s1 + $0x8] sm:$0xff] %v696_v36 }
  0x2e   :  { %v454_v54 = vld [vmem:[#allocation0 + $0x157] ss:$-1 sm:$0xff]  ;;  %422 = vst.msk [vmem:[#allocation1 + $0x90] sm:$0xff] %vm169_vm0, %v418_v47  ;;  %428 = vst [vmem:[#allocation1 + $0x98] sm:$0xff] %v427_v48  ;;  %v446_v55 = vrot.slane %v445_v53, 1  ;;  %v700_v39 = vld [vmem:[#allocation1 + $0x18] sm:$0xff] }
  0x2f   :  { %v455_v56 = vrot.slane %v454_v54, 1  ;;  %v459_v57 = vld [vmem:[#allocation0 + $0x15f] ss:$-1 sm:$0xff]  ;;  %v468_v58 = vld [vmem:[#allocation0 + $0x167] ss:$-1 sm:$0xff]  ;;  %436 = vst.msk [vmem:[#allocation1 + $0x98] sm:$0xff] %vm169_vm0, %v432_v51 }
  0x30   :  { %442 = vst [vmem:[#allocation1 + $0xa0] sm:$0xff] %v441_v52  ;;  %v460_v59 = vrot.slane %v459_v57, 1  ;;  %v469_v60 = vrot.slane %v468_v58, 1  ;;  %v473_v61 = vld [vmem:[#allocation0 + $0x16f] ss:$-1 sm:$0xff]  ;;  %v698_v38 = vld [vmem:[#allocation1 + $0x10] sm:$0xff] }
  0x31   :  { %v482_v62 = vld [vmem:[#allocation0 + $0x177] ss:$-1 sm:$0xff]  ;;  %450 = vst.msk [vmem:[#allocation1 + $0xa0] sm:$0xff] %vm169_vm0, %v446_v55  ;;  %456 = vst [vmem:[#allocation1 + $0xa8] sm:$0xff] %v455_v56  ;;  %v474_v63 = vrot.slane %v473_v61, 1  ;;  %v702_v40 = vld [vmem:[#allocation1 + $0x20] sm:$0xff] }
  0x32   :  { %v483_v0 = vrot.slane %v482_v62, 1  ;;  %v487_v1 = vld [vmem:[#allocation0 + $0x17f] ss:$-1 sm:$0xff]  ;;  %v496_v2 = vld [vmem:[#allocation0 + $0x187] ss:$-1 sm:$0xff]  ;;  %464 = vst.msk [vmem:[#allocation1 + $0xa8] sm:$0xff] %vm169_vm0, %v460_v59 }
  0x33   :  { %470 = vst [vmem:[#allocation1 + $0xb0] sm:$0xff] %v469_v60  ;;  %v488_v3 = vrot.slane %v487_v1, 1  ;;  %v497_v4 = vrot.slane %v496_v2, 1  ;;  %v501_v5 = vld [vmem:[#allocation0 + $0x18f] ss:$-1 sm:$0xff]  ;;  %699 = vst [vmem:[%s1133_s1 + $0x10] sm:$0xff] %v698_v38 }
  0x34   :  { %v510_v6 = vld [vmem:[#allocation0 + $0x197] ss:$-1 sm:$0xff]  ;;  %478 = vst.msk [vmem:[#allocation1 + $0xb0] sm:$0xff] %vm169_vm0, %v474_v63  ;;  %484 = vst [vmem:[#allocation1 + $0xb8] sm:$0xff] %v483_v0  ;;  %v502_v7 = vrot.slane %v501_v5, 1  ;;  %v704_v41 = vld [vmem:[#allocation1 + $0x28] sm:$0xff] }
  0x35   :  { %v511_v8 = vrot.slane %v510_v6, 1  ;;  %v515_v9 = vld [vmem:[#allocation0 + $0x19f] ss:$-1 sm:$0xff]  ;;  %v524_v10 = vld [vmem:[#allocation0 + $0x1a7] ss:$-1 sm:$0xff]  ;;  %492 = vst.msk [vmem:[#allocation1 + $0xb8] sm:$0xff] %vm169_vm0, %v488_v3 }
  0x36   :  { %498 = vst [vmem:[#allocation1 + $0xc0] sm:$0xff] %v497_v4  ;;  %v516_v11 = vrot.slane %v515_v9, 1  ;;  %v525_v12 = vrot.slane %v524_v10, 1  ;;  %v529_v13 = vld [vmem:[#allocation0 + $0x1af] ss:$-1 sm:$0xff]  ;;  %701 = vst [vmem:[%s1133_s1 + $0x18] sm:$0xff] %v700_v39 }
  0x37   :  { %v538_v14 = vld [vmem:[#allocation0 + $0x1b7] ss:$-1 sm:$0xff]  ;;  %506 = vst.msk [vmem:[#allocation1 + $0xc0] sm:$0xff] %vm169_vm0, %v502_v7  ;;  %512 = vst [vmem:[#allocation1 + $0xc8] sm:$0xff] %v511_v8  ;;  %v530_v15 = vrot.slane %v529_v13, 1  ;;  %v708_v43 = vld [vmem:[#allocation1 + $0x38] sm:$0xff] }
  0x38   :  { %v539_v16 = vrot.slane %v538_v14, 1  ;;  %v543_v17 = vld [vmem:[#allocation0 + $0x1bf] ss:$-1 sm:$0xff]  ;;  %v552_v18 = vld [vmem:[#allocation0 + $0x1c7] ss:$-1 sm:$0xff]  ;;  %520 = vst.msk [vmem:[#allocation1 + $0xc8] sm:$0xff] %vm169_vm0, %v516_v11 }
  0x39   :  { %526 = vst [vmem:[#allocation1 + $0xd0] sm:$0xff] %v525_v12  ;;  %v544_v19 = vrot.slane %v543_v17, 1  ;;  %v553_v20 = vrot.slane %v552_v18, 1  ;;  %v557_v21 = vld [vmem:[#allocation0 + $0x1cf] ss:$-1 sm:$0xff]  ;;  %703 = vst [vmem:[%s1133_s1 + $0x20] sm:$0xff] %v702_v40 }
  0x3a   :  { %v566_v22 = vld [vmem:[#allocation0 + $0x1d7] ss:$-1 sm:$0xff]  ;;  %534 = vst.msk [vmem:[#allocation1 + $0xd0] sm:$0xff] %vm169_vm0, %v530_v15  ;;  %540 = vst [vmem:[#allocation1 + $0xd8] sm:$0xff] %v539_v16  ;;  %v558_v23 = vrot.slane %v557_v21, 1  ;;  %v712_v44 = vld [vmem:[#allocation1 + $0x48] sm:$0xff] }
  0x3b   :  { %v567_v24 = vrot.slane %v566_v22, 1  ;;  %v571_v26 = vld [vmem:[#allocation0 + $0x1df] ss:$-1 sm:$0xff]  ;;  %v580_v27 = vld [vmem:[#allocation0 + $0x1e7] ss:$-1 sm:$0xff]  ;;  %548 = vst.msk [vmem:[#allocation1 + $0xd8] sm:$0xff] %vm169_vm0, %v544_v19 }
  0x3c   :  { %554 = vst [vmem:[#allocation1 + $0xe0] sm:$0xff] %v553_v20  ;;  %v572_v28 = vrot.slane %v571_v26, 1  ;;  %v581_v29 = vrot.slane %v580_v27, 1  ;;  %v585_v30 = vld [vmem:[#allocation0 + $0x1ef] ss:$-1 sm:$0xff]  ;;  %v706_v42 = vld [vmem:[#allocation1 + $0x30] sm:$0xff] }
  0x3d   :  { %v594_v31 = vld [vmem:[#allocation0 + $0x1f7] ss:$-1 sm:$0xff]  ;;  %562 = vst.msk [vmem:[#allocation1 + $0xe0] sm:$0xff] %vm169_vm0, %v558_v23  ;;  %568 = vst [vmem:[#allocation1 + $0xe8] sm:$0xff] %v567_v24  ;;  %v586_v32 = vrot.slane %v585_v30, 1  ;;  %v716_v46 = vld [vmem:[#allocation1 + $0x58] sm:$0xff] }
  0x3e   :  { %v595_v33 = vrot.slane %v594_v31, 1  ;;  %v599_v34 = vld [vmem:[#allocation0 + $0x1ff] ss:$-1 sm:$0xff]  ;;  %576 = vst.msk [vmem:[#allocation1 + $0xe8] sm:$0xff] %vm169_vm0, %v572_v28  ;;  %582 = vst [vmem:[#allocation1 + $0xf0] sm:$0xff] %v581_v29  ;;  %v714_v45 = vld [vmem:[#allocation1 + $0x50] sm:$0xff] }
  0x3f   :  { %v600_v37 = vrot.slane %v599_v34, 1  ;;  %590 = vst.msk [vmem:[#allocation1 + $0xf0] sm:$0xff] %vm169_vm0, %v586_v32  ;;  %705 = vst [vmem:[%s1133_s1 + $0x28] sm:$0xff] %v704_v41  ;;  %v718_v47 = vld [vmem:[#allocation1 + $0x60] sm:$0xff]  ;;  %v720_v48 = vld [vmem:[#allocation1 + $0x68] sm:$0xff] }
  0x40   :  { %596 = vst [vmem:[#allocation1 + $0xf8] sm:$0xff] %v595_v33  ;;  %707 = vst [vmem:[%s1133_s1 + $0x30] sm:$0xff] %v706_v42  ;;  %v722_v49 = vld [vmem:[#allocation1 + $0x70] sm:$0xff]  ;;  %v724_v50 = vld [vmem:[#allocation1 + $0x78] sm:$0xff] }
  0x41   :  { %604 = vst.msk [vmem:[#allocation1 + $0xf8] sm:$0xff] %vm169_vm0, %v600_v37  ;;  %709 = vst [vmem:[%s1133_s1 + $0x38] sm:$0xff] %v708_v43  ;;  %v726_v51 = vld [vmem:[#allocation1 + $0x80] sm:$0xff]  ;;  %v728_v52 = vld [vmem:[#allocation1 + $0x88] sm:$0xff] }
  0x42   :  { %711 = vst [vmem:[%s1133_s1 + $0x40] sm:$0xff] %v710_v25  ;;  %713 = vst [vmem:[%s1133_s1 + $0x48] sm:$0xff] %v712_v44  ;;  %v730_v53 = vld [vmem:[#allocation1 + $0x90] sm:$0xff]  ;;  %v732_v54 = vld [vmem:[#allocation1 + $0x98] sm:$0xff] }
  0x43   :  { %715 = vst [vmem:[%s1133_s1 + $0x50] sm:$0xff] %v714_v45  ;;  %717 = vst [vmem:[%s1133_s1 + $0x58] sm:$0xff] %v716_v46  ;;  %v734_v55 = vld [vmem:[#allocation1 + $0xa0] sm:$0xff]  ;;  %v736_v56 = vld [vmem:[#allocation1 + $0xa8] sm:$0xff] }
  0x44   :  { %719 = vst [vmem:[%s1133_s1 + $0x60] sm:$0xff] %v718_v47  ;;  %721 = vst [vmem:[%s1133_s1 + $0x68] sm:$0xff] %v720_v48  ;;  %v738_v57 = vld [vmem:[#allocation1 + $0xb0] sm:$0xff]  ;;  %v740_v58 = vld [vmem:[#allocation1 + $0xb8] sm:$0xff] }
  0x45   :  { %723 = vst [vmem:[%s1133_s1 + $0x70] sm:$0xff] %v722_v49  ;;  %725 = vst [vmem:[%s1133_s1 + $0x78] sm:$0xff] %v724_v50  ;;  %v742_v59 = vld [vmem:[#allocation1 + $0xc0] sm:$0xff]  ;;  %v744_v60 = vld [vmem:[#allocation1 + $0xc8] sm:$0xff] }
  0x46   :  { %727 = vst [vmem:[%s1133_s1 + $0x80] sm:$0xff] %v726_v51  ;;  %729 = vst [vmem:[%s1133_s1 + $0x88] sm:$0xff] %v728_v52  ;;  %v746_v61 = vld [vmem:[#allocation1 + $0xd0] sm:$0xff]  ;;  %v748_v62 = vld [vmem:[#allocation1 + $0xd8] sm:$0xff] }
  0x47   :  { %731 = vst [vmem:[%s1133_s1 + $0x90] sm:$0xff] %v730_v53  ;;  %733 = vst [vmem:[%s1133_s1 + $0x98] sm:$0xff] %v732_v54  ;;  %v750_v63 = vld [vmem:[#allocation1 + $0xe0] sm:$0xff]  ;;  %v752_v0 = vld [vmem:[#allocation1 + $0xe8] sm:$0xff] }
  0x48   :  { %735 = vst [vmem:[%s1133_s1 + $0xa0] sm:$0xff] %v734_v55  ;;  %737 = vst [vmem:[%s1133_s1 + $0xa8] sm:$0xff] %v736_v56  ;;  %v754_v1 = vld [vmem:[#allocation1 + $0xf0] sm:$0xff]  ;;  %v756_v2 = vld [vmem:[#allocation1 + $0xf8] sm:$0xff] }
  0x49   :  { %739 = vst [vmem:[%s1133_s1 + $0xb0] sm:$0xff] %v738_v57  ;;  %741 = vst [vmem:[%s1133_s1 + $0xb8] sm:$0xff] %v740_v58 }
  0x4a   :  { %743 = vst [vmem:[%s1133_s1 + $0xc0] sm:$0xff] %v742_v59  ;;  %745 = vst [vmem:[%s1133_s1 + $0xc8] sm:$0xff] %v744_v60 }
  0x4b   :  { %747 = vst [vmem:[%s1133_s1 + $0xd0] sm:$0xff] %v746_v61  ;;  %749 = vst [vmem:[%s1133_s1 + $0xd8] sm:$0xff] %v748_v62 }
  0x4c   :  { %751 = vst [vmem:[%s1133_s1 + $0xe0] sm:$0xff] %v750_v63  ;;  %753 = vst [vmem:[%s1133_s1 + $0xe8] sm:$0xff] %v752_v0 }
  0x4d   :  { %755 = vst [vmem:[%s1133_s1 + $0xf0] sm:$0xff] %v754_v1  ;;  %757 = vst [vmem:[%s1133_s1 + $0xf8] sm:$0xff] %v756_v2 }

</bundles_post_ra>
